<compile_context>
chip_gen: v7x
topology: tpu7x:2x2x1
jax: 0.10.0
libtpu: 0.0.40
codegen_flags: <defaults>
</compile_context>

<pallas_src>
import functools
import math

import jax
import jax.numpy as jnp
from jax.experimental import pallas as pl
from jax.experimental.pallas import tpu as pltpu

_LANE = 128


def _round_up(x, m):
    return (x + m - 1) // m * m


def _dice_kernel(pred_ref, gt_ref, dice_ref, inter_acc, pg_acc, *,
                 eps, spatial_len, spatial_tile, mask_tail):
    j = pl.program_id(1)
    nj = pl.num_programs(1)

    @pl.when(j == 0)
    def _():
        inter_acc[...] = jnp.zeros_like(inter_acc)
        pg_acc[...] = jnp.zeros_like(pg_acc)

    p = pred_ref[...].astype(jnp.float32)
    g = gt_ref[...].astype(jnp.float32)

    if mask_tail:
        # Ragged last spatial tile: zero lanes past the true length so the
        # (undefined) out-of-bounds block contents cannot corrupt the sums.
        lane = jax.lax.broadcasted_iota(jnp.int32, p.shape, 1)
        valid = (j * spatial_tile + lane) < spatial_len
        p = jnp.where(valid, p, 0.0)
        g = jnp.where(valid, g, 0.0)

    # Per-sample partial reductions over the lane-dense spatial tile.
    inter_acc[...] += jnp.sum(p * g, axis=-1, keepdims=True)
    pg_acc[...] += jnp.sum(p + g, axis=-1, keepdims=True)  # fused sum(p)+sum(g)

    @pl.when(j == nj - 1)
    def _():
        dice_ref[...] = (2.0 * inter_acc[...] + eps) / (pg_acc[...] + eps)


def dice_loss(pred, gt, eps=1e-12):
    """pred, gt: (N, 1, H, W) arrays. Returns scalar loss (float32)."""
    assert pred.shape == gt.shape and pred.shape[1] == 1
    N = pred.shape[0]
    L = math.prod(pred.shape[1:])  # = H * W since C == 1

    # Stream inputs in their native dtype (no wrapper upcast / pad); the
    # reshape below is a free row-major bitcast.
    pred2 = pred.reshape(N, L)
    gt2 = gt.reshape(N, L)

    isz_p = jnp.dtype(pred2.dtype).itemsize
    isz_g = jnp.dtype(gt2.dtype).itemsize
    itemsize = max(isz_p, isz_g)
    # Packed-sublane granule of the narrowest dtype (f32->8, bf16->16, i8->32).
    _gran = {4: 8, 2: 16, 1: 32}
    granule = max(_gran.get(isz_p, 8), _gran.get(isz_g, 8))

    # --- VMEM budget (generation-aware) --------------------------------------
    try:
        vmem_cap = int(pltpu.get_tpu_info().vmem_capacity_bytes)
    except Exception:
        vmem_cap = 64 * 1024 * 1024  # conservative: v7x per-core VMEM
    # Ask the compiler for ~3/4 of physical VMEM (capped); 48 MiB on v7x,
    # 96 MiB on v5e/v6e.
    vmem_limit = int(min((vmem_cap * 3) // 4, 96 * 1024 * 1024))
    # Per-input tile: 2 inputs x 2 pipeline buffers + scratch must fit with
    # headroom -> tile <= vmem_limit / 6, target 8 MiB.
    tile_budget_bytes = min(8 * 1024 * 1024, vmem_limit // 6)
    tile_budget_elems = max(_LANE * granule, tile_budget_bytes // itemsize)

    # --- Batch tiling ---------------------------------------------------------
    if N >= 16 and N > granule:
        # >= 2 granule-aligned "parallel" blocks so both v7x TensorCores work.
        TB = min(_round_up(pl.cdiv(N, 2), granule), 32)
        if TB >= N:
            TB = N
    else:
        # Full second-to-last dim is exempt from the sublane rule: no padding.
        TB = N

    # --- Spatial tiling -------------------------------------------------------
    if TB * L <= tile_budget_elems:
        TL = L                      # full last dim: exempt from the 128 rule
        mask_tail = False
    else:
        TL = max(_LANE, (tile_budget_elems // TB) // _LANE * _LANE)
        mask_tail = (L % TL) != 0   # ragged last tile -> in-kernel lane mask

    grid = (pl.cdiv(N, TB), pl.cdiv(L, TL))

    kernel = functools.partial(
        _dice_kernel, eps=eps, spatial_len=L, spatial_tile=TL,
        mask_tail=mask_tail)

    cost = pl.CostEstimate(
        flops=3 * N * L,
        transcendentals=0,
        bytes_accessed=N * L * (isz_p + isz_g) + N * 4,
    )

    dice = pl.pallas_call(
        kernel,
        out_shape=jax.ShapeDtypeStruct((N, 1), jnp.float32),
        grid_spec=pltpu.PrefetchScalarGridSpec(
            num_scalar_prefetch=0,
            grid=grid,
            in_specs=[
                pl.BlockSpec((TB, TL), lambda i, j: (i, j)),
                pl.BlockSpec((TB, TL), lambda i, j: (i, j)),
            ],
            out_specs=pl.BlockSpec((TB, 1), lambda i, j: (i, 0)),
            scratch_shapes=[
                pltpu.VMEM((TB, 1), jnp.float32),  # per-sample intersection
                pltpu.VMEM((TB, 1), jnp.float32),  # per-sample sum(p)+sum(g)
            ],
        ),
        compiler_params=pltpu.CompilerParams(
            dimension_semantics=("parallel", "arbitrary"),
            vmem_limit_bytes=vmem_limit,
        ),
        cost_estimate=cost,
    )(pred2, gt2)

    # All N output rows are valid (boundary-block writes past N are discarded),
    # so finalize directly: loss = 1 - mean(dice).
    return 1.0 - jnp.mean(dice)


def _dice_loss_ref(pred, gt, eps=1e-12):
    N = pred.shape[0]
    pred_flat = pred.reshape(N, -1).astype(jnp.float32)
    gt_flat = gt.reshape(N, -1).astype(jnp.float32)
    intersection = (pred_flat * gt_flat).sum(1)
    dice = (2.0 * intersection + eps) / (pred_flat.sum(1) + gt_flat.sum(1) + eps)
    return 1.0 - dice.mean()


if __name__ == "__main__":
    key = jax.random.PRNGKey(0)
    k1, k2 = jax.random.split(key)
    N, C, H, W = 2, 1, 16, 16
    pred = jax.nn.sigmoid(jax.random.normal(k1, (N, C, H, W), dtype=jnp.float32))
    gt = (jax.random.uniform(k2, (N, C, H, W)) > 0.5).astype(jnp.float32)

    loss = dice_loss(pred, gt)
    jax.block_until_ready(loss)

    ref = _dice_loss_ref(pred, gt)
    assert jnp.allclose(loss, ref, atol=1e-5, rtol=1e-5), (loss, ref)

    print("KERNEL_OK")
</pallas_src>

<mosaic_0001>
module attributes {stable_mosaic.version = 11 : i64} {
  func.func @_dice_kernel(%arg0: i32, %arg1: i32, %arg2: memref<2x256xf32, #tpu.memory_space<vmem>>, %arg3: memref<2x256xf32, #tpu.memory_space<vmem>>, %arg4: memref<2x1xf32, #tpu.memory_space<vmem>>, %arg5: memref<2x1xf32, #tpu.memory_space<vmem>>, %arg6: memref<2x1xf32, #tpu.memory_space<vmem>>) attributes {dimension_semantics = [#tpu.dimension_semantics<parallel>, #tpu.dimension_semantics<arbitrary>], iteration_bounds = array<i64: 1, 1>, scalar_prefetch = 0 : i64, scratch_operands = 2 : i64, tpu.core_type = #tpu.core_type<tc>, window_params = [{transform_indices = @transform_0, window_bounds = array<i64: 2, 256>}, {transform_indices = @transform_1, window_bounds = array<i64: 2, 256>}, {transform_indices = @transform_2, window_bounds = array<i64: 2, 1>}]} {
    %c0_i32 = arith.constant 0 : i32
    %0 = arith.cmpi eq, %arg1, %c0_i32 : i32
    %1 = arith.extui %0 : i1 to i32
    %c0_i32_0 = arith.constant 0 : i32
    %2 = arith.cmpi ne, %1, %c0_i32_0 : i32
    scf.if %2 {
      %cst_15 = arith.constant 0.000000e+00 : f32
      %20 = vector.broadcast %cst_15 : f32 to vector<2x1xf32>
      %c0_16 = arith.constant 0 : index
      %c0_17 = arith.constant 0 : index
      %21 = vector.load %arg5[%c0_16, %c0_17] : memref<2x1xf32, #tpu.memory_space<vmem>>, vector<2x1xf32>
      tpu.vector_store %arg5[%c0_16, %c0_17], %20 {strides = array<i32>} : memref<2x1xf32, #tpu.memory_space<vmem>>, vector<2x1xf32>,
      %cst_18 = arith.constant 0.000000e+00 : f32
      %22 = vector.broadcast %cst_18 : f32 to vector<2x1xf32>
      %c0_19 = arith.constant 0 : index
      %c0_20 = arith.constant 0 : index
      %23 = vector.load %arg6[%c0_19, %c0_20] : memref<2x1xf32, #tpu.memory_space<vmem>>, vector<2x1xf32>
      tpu.vector_store %arg6[%c0_19, %c0_20], %22 {strides = array<i32>} : memref<2x1xf32, #tpu.memory_space<vmem>>, vector<2x1xf32>,
    } else {
    }
    %c0 = arith.constant 0 : index
    %c0_1 = arith.constant 0 : index
    %3 = vector.load %arg2[%c0, %c0_1] : memref<2x256xf32, #tpu.memory_space<vmem>>, vector<2x256xf32>
    %c0_2 = arith.constant 0 : index
    %c0_3 = arith.constant 0 : index
    %4 = vector.load %arg3[%c0_2, %c0_3] : memref<2x256xf32, #tpu.memory_space<vmem>>, vector<2x256xf32>
    %c0_4 = arith.constant 0 : index
    %c0_5 = arith.constant 0 : index
    %5 = vector.load %arg5[%c0_4, %c0_5] : memref<2x1xf32, #tpu.memory_space<vmem>>, vector<2x1xf32>
    %6 = arith.mulf %3, %4 : vector<2x256xf32>
    %cst = arith.constant dense<0.000000e+00> : vector<2xf32>
    %7 = vector.multi_reduction <add>, %6, %cst [1] : vector<2x256xf32> to vector<2xf32>
    %8 = vector.shape_cast %7 : vector<2xf32> to vector<2x1xf32>
    %9 = arith.addf %5, %8 : vector<2x1xf32>
    %c0_6 = arith.constant 0 : index
    %c0_7 = arith.constant 0 : index
    %10 = vector.load %arg5[%c0_6, %c0_7] : memref<2x1xf32, #tpu.memory_space<vmem>>, vector<2x1xf32>
    tpu.vector_store %arg5[%c0_6, %c0_7], %9 {strides = array<i32>} : memref<2x1xf32, #tpu.memory_space<vmem>>, vector<2x1xf32>,
    %c0_8 = arith.constant 0 : index
    %c0_9 = arith.constant 0 : index
    %11 = vector.load %arg6[%c0_8, %c0_9] : memref<2x1xf32, #tpu.memory_space<vmem>>, vector<2x1xf32>
    %12 = arith.addf %3, %4 : vector<2x256xf32>
    %cst_10 = arith.constant dense<0.000000e+00> : vector<2xf32>
    %13 = vector.multi_reduction <add>, %12, %cst_10 [1] : vector<2x256xf32> to vector<2xf32>
    %14 = vector.shape_cast %13 : vector<2xf32> to vector<2x1xf32>
    %15 = arith.addf %11, %14 : vector<2x1xf32>
    %c0_11 = arith.constant 0 : index
    %c0_12 = arith.constant 0 : index
    %16 = vector.load %arg6[%c0_11, %c0_12] : memref<2x1xf32, #tpu.memory_space<vmem>>, vector<2x1xf32>
    tpu.vector_store %arg6[%c0_11, %c0_12], %15 {strides = array<i32>} : memref<2x1xf32, #tpu.memory_space<vmem>>, vector<2x1xf32>,
    %c0_i32_13 = arith.constant 0 : i32
    %17 = arith.cmpi eq, %arg1, %c0_i32_13 : i32
    %18 = arith.extui %17 : i1 to i32
    %c0_i32_14 = arith.constant 0 : i32
    %19 = arith.cmpi ne, %18, %c0_i32_14 : i32
    scf.if %19 {
      %c0_15 = arith.constant 0 : index
      %c0_16 = arith.constant 0 : index
      %20 = vector.load %arg5[%c0_15, %c0_16] : memref<2x1xf32, #tpu.memory_space<vmem>>, vector<2x1xf32>
      %cst_17 = arith.constant 2.000000e+00 : f32
      %21 = vector.broadcast %cst_17 : f32 to vector<2x1xf32>
      %22 = arith.mulf %21, %20 : vector<2x1xf32>
      %cst_18 = arith.constant 9.99999996E-13 : f32
      %23 = vector.broadcast %cst_18 : f32 to vector<2x1xf32>
      %24 = arith.addf %22, %23 : vector<2x1xf32>
      %c0_19 = arith.constant 0 : index
      %c0_20 = arith.constant 0 : index
      %25 = vector.load %arg6[%c0_19, %c0_20] : memref<2x1xf32, #tpu.memory_space<vmem>>, vector<2x1xf32>
      %cst_21 = arith.constant 9.99999996E-13 : f32
      %26 = vector.broadcast %cst_21 : f32 to vector<2x1xf32>
      %27 = arith.addf %25, %26 : vector<2x1xf32>
      %28 = arith.divf %24, %27 : vector<2x1xf32>
      %c0_22 = arith.constant 0 : index
      %c0_23 = arith.constant 0 : index
      %29 = vector.load %arg4[%c0_22, %c0_23] : memref<2x1xf32, #tpu.memory_space<vmem>>, vector<2x1xf32>
      tpu.vector_store %arg4[%c0_22, %c0_23], %28 {strides = array<i32>} : memref<2x1xf32, #tpu.memory_space<vmem>>, vector<2x1xf32>,
    } else {
    }
    return
  }
  func.func @transform_0(%arg0: i32, %arg1: i32) -> (i32, i32) {
    %c0_i32 = arith.constant 0 : i32
    return %arg0, %arg1 : i32, i32
  }
  func.func @transform_1(%arg0: i32, %arg1: i32) -> (i32, i32) {
    %c0_i32 = arith.constant 0 : i32
    return %arg0, %arg1 : i32, i32
  }
  func.func @transform_2(%arg0: i32, %arg1: i32) -> (i32, i32) {
    %c0_i32 = arith.constant 0 : i32
    %c0_i32_0 = arith.constant 0 : i32
    return %arg0, %c0_i32 : i32, i32
  }
}

</mosaic_0001>

<bundles_post_ra>
// kernel: tpu_custom_call.1
= control target key start
LH: loop header
LB: loop body
LE: loop exit
PB: predicated region body
PF: predicated region fallthrough
CT: control target
= control target key end

     0   :  { %7 = vsyncpa [#allocation5], 0  ;;  %s208_s0 = inlined_call_operand.hbm [shape: f32[2,256], index: 0, kind: input, shape index: {}]   ;;  %s209_s1 = inlined_call_operand.hbm [shape: f32[2,256], index: 1, kind: input, shape index: {}]   ;;  %s210_s2 = inlined_call_operand.vmem [shape: f32[2,1], index: 2, kind: output, shape index: {}]  }
   0x1   :  { %8 = vsyncpa [#allocation7], 0  ;;  %s157_s9 = smov [#allocation4]   ;;  %s158_s11 = smov [#allocation6]  }
   0x2   :  { %s15_s10 = sshll.u32 %s157_s9, 4  ;;  %s25_s12 = sshll.u32 %s158_s11, 4  ;;  %s16_s10 = int_to_ptr.vmem [resolvable:$true] %s15_s10  ;;  %s26_s12 = int_to_ptr.vmem [resolvable:$true] %s25_s12 }
   0x3   :  { %s109_s15 = scalar_lea.hbm %s208_s0, 64 }
   0x4   :  { %p110_p0 = scmp.ne.s32.totalorder %s208_s0, %s109_s15  ;;  %p113_p1 = scmp.lt.u32.totalorder %s109_s15, %s208_s0 }
   0x6   :  { %p115_p2 = pnand %p113_p1, %p110_p0 }
   0x8   :  { %118 = shalt.err (!%p115_p2)
}
   0x9   :  { %s119_s20 = scalar_lea.vmem %s16_s10, 64  ;;  %p124_p4 = scmp.lt.s32.totalorder %s16_s10, %s16_s10 }
   0xa   :  { %p120_p3 = scmp.ne.s32.totalorder %s16_s10, %s119_s20  ;;  %p125_p5 = scmp.lt.s32.totalorder %s119_s20, %s119_s20 }
   0xc   :  { %p126_p6 = por %p125_p5, %p124_p4 }
   0xe   :  { %p127_p7 = pnand %p126_p6, %p120_p3 }
  0x10   :  { %130 = shalt.err (!%p127_p7)
}
  0x11   :  { %18 = dma.hbm_to_vmem [thread:$0]  %s208_s0, 64, %s16_s10, [#allocation5]  }
  0x12   :  { %s131_s25 = scalar_lea.hbm %s209_s1, 64 }
  0x13   :  { %p132_p8 = scmp.ne.s32.totalorder %s209_s1, %s131_s25  ;;  %p135_p9 = scmp.lt.u32.totalorder %s131_s25, %s209_s1 }
  0x15   :  { %p137_p10 = pnand %p135_p9, %p132_p8 }
  0x17   :  { %140 = shalt.err (!%p137_p10)
}
  0x18   :  { %s141_s30 = scalar_lea.vmem %s26_s12, 64  ;;  %p146_p12 = scmp.lt.s32.totalorder %s26_s12, %s26_s12 }
  0x19   :  { %p142_p11 = scmp.ne.s32.totalorder %s26_s12, %s141_s30  ;;  %p147_p13 = scmp.lt.s32.totalorder %s141_s30, %s141_s30 }
  0x1b   :  { %p148_p0 = por %p147_p13, %p146_p12 }
  0x1d   :  { %p149_p1 = pnand %p148_p0, %p142_p11 }
  0x1f   :  { %152 = shalt.err (!%p149_p1)
}
  0x20   :  { %28 = dma.hbm_to_vmem [thread:$0]  %s209_s1, 64, %s26_s12, [#allocation7]  }
  0x21   :  { %153 = dma.done.wait [#allocation5], 64  }
  0x22   :  { %154 = vsyncadd [#allocation5], 4294967232 }
  0x23   :  { %155 = dma.done.wait [#allocation7], 64  }
  0x24   :  { %156 = vsyncadd [#allocation7], 4294967232  ;;  %v50_v0 = vlaneseq  ;;  %vm39_vm0 = vcmask 1024   ;;  %v159_v1 = vmov 1983009808   ;;  %v160_v4 = vmov 0.0  }
  0x25   :  { %v48_v2 = vunpack.c.l.s4 %v159_v1  ;;  %41 = vst.msk [vmem:[#allocation3] sm:$0x3] %vm39_vm0, %v160_v4  ;;  %40 = vst.msk [vmem:[#allocation2] sm:$0x3] %vm39_vm0, %v160_v4  ;;  %v42_v7 = vld [vmem:[#allocation4] sm:$0xf] }
  0x26   :  { %v51_v3 = vshrl.u32 %v50_v0, 7  ;;  %v43_v8 = vld [vmem:[#allocation6] sm:$0xf]  ;;  %vm57_vm1 = vcmask 1041408  }
  0x27   :  { %v49_v5 = vunpack.c.0.s8 %v48_v2  ;;  %v67_v9 = vadd.f32 %v43_v8, %v42_v7  ;;  %v45_v10 = vmul.f32 %v43_v8, %v42_v7 }
  0x29   :  { %v52_v6 = vsub.s32 %v49_v5, %v51_v3 }
  0x2b   :  { %v75_v11 = vrot.slane %v67_v9, %v52_v6  ;;  %v53_v12 = vrot.slane %v45_v10, %v52_v6 }
  0x2c   :  { %v66_v21 = vld [vmem:[#allocation3] sm:$0x3]  ;;  %v44_v24 = vld [vmem:[#allocation2] sm:$0x3] }
  0x2d   :  { %v76_v13 = vcombine.high %v75_v11, %v75_v11  ;;  %v79_v14 = vsel %vm57_vm1, %v75_v11, 0.0  ;;  %v54_v15 = vcombine.high %v53_v12, %v53_v12  ;;  %v58_v17 = vsel %vm57_vm1, %v53_v12, 0.0 }
  0x2f   :  { %v80_v16 = vsel %vm57_vm1, %v76_v13, 0.0  ;;  %v59_v18 = vsel %vm57_vm1, %v54_v15, 0.0 }
  0x30   :  { %v81_v19 = vadd.f32 %v80_v16, %v79_v14  ;;  %v60_v20 = vadd.f32 %v59_v18, %v58_v17 }
  0x32   :  { %82 = vadd.xlane.f32.xlu0 %v81_v19 }
  0x36   :  { %61 = vadd.xlane.f32.xlu0 %v60_v20 }
  0xbf   :  { %v83_v22 = vpop.xlane.xlu0 %82 }
  0xc0   :  { %v84_v23 = vadd.f32 %v83_v22, %v66_v21 }
  0xc2   :  { %85 = vst.msk [vmem:[#allocation3] sm:$0x3] %vm39_vm0, %v84_v23 }
  0xc3   :  { %v62_v25 = vpop.xlane.xlu0 %61 }
  0xc4   :  { %v63_v26 = vadd.f32 %v62_v25, %v44_v24 }
  0xc6   :  { %65 = vst.msk [vmem:[#allocation2] sm:$0x3] %vm39_vm0, %v63_v26 }
  0xc9   :  { %v92_v27 = vld [vmem:[#allocation3] sm:$0x3] }
  0xca   :  { %v93_v28 = vadd.f32 1e-12, %v92_v27 }
  0xcc   :  { %107 = vrcp.f32 %v93_v28 }
  0xcd   :  { %v89_v29 = vld [vmem:[#allocation2] sm:$0x3] }
  0xce   :  { %v90_v30 = vmul.f32 2.0, %v89_v29 }
  0xd0   :  { %v91_v31 = vadd.f32 1e-12, %v90_v30 }
  0xd6   :  { %v108_v32 = vpop.eup %107 }
  0xd7   :  { %v95_v33 = vmul.f32 %v108_v32, %v91_v31 }
  0xd9   :  { %96 = vst.msk [vmem:[%s210_s2] sm:$0x3] %vm39_vm0, %v95_v33 }
  0xda   :  { %101 = vsyncpa [#allocation5], 1 }
  0xdb   :  { %102 = vsyncpa [#allocation7], 1 }

</bundles_post_ra>
